<compile_context>
chip_gen: v7x
topology: tpu7x:2x2x1
jax: 0.10.0
libtpu: 0.0.40
codegen_flags: <defaults>
</compile_context>

<pallas_src>
import math

import jax
import jax.numpy as jnp
from jax import lax
from jax.experimental import pallas as pl
from jax.experimental.pallas import tpu as pltpu


_INV_SQRT2 = 1.0 / math.sqrt(2.0)


def _mlp_kernel(x_ref, w1_ref, b1_ref, w2_ref, b2_ref, o_ref, acc_ref):
    """Grid = (row tiles, hidden chunks).  fc2 accumulates over hidden chunks."""
    k = pl.program_id(1)

    @pl.when(k == 0)
    def _():
        acc_ref[...] = jnp.zeros_like(acc_ref)

    # fc1 slice: (tm, D_in) @ (D_in, th)  -> f32 accumulation on the MXU
    h = jnp.dot(x_ref[...], w1_ref[...], preferred_element_type=jnp.float32)
    h = h + b1_ref[...]                                   # (1, th) broadcasts

    # exact erf-GELU (torch.nn.GELU default), kept in f32 for the VPU/EUP
    h = 0.5 * h * (1.0 + lax.erf(h * _INV_SQRT2))

    # dropout(p=0.0) is the identity -> elided.

    # fc2 slice: (tm, th) @ (th, D_out), accumulate in f32 scratch
    acc_ref[...] += jnp.dot(h.astype(w2_ref.dtype), w2_ref[...],
                            preferred_element_type=jnp.float32)

    @pl.when(k == pl.num_programs(1) - 1)
    def _():
        o_ref[...] = (acc_ref[...] + b2_ref[...]).astype(o_ref.dtype)


def _round_up(n, m):
    return ((n + m - 1) // m) * m


def _pad_axis(a, axis, target):
    pad = target - a.shape[axis]
    if pad == 0:
        return a
    widths = [(0, 0)] * a.ndim
    widths[axis] = (0, pad)
    return jnp.pad(a, widths)


def mlp_forward(x, w1, b1, w2, b2, *, tile_m=256, hidden_tile=512,
                compute_dtype=jnp.bfloat16):
    """x: (..., D_in); w1: (D_in, H); b1: (H,); w2: (H, D_out); b2: (D_out,)."""
    orig_shape = x.shape
    D_in = orig_shape[-1]
    H = w1.shape[1]
    D_out = w2.shape[1]
    out_dtype = x.dtype
    M = math.prod(orig_shape[:-1])

    # Row tile: multiple of the sublane quantum, clamped to the (padded) row count.
    sub = 16 if jnp.dtype(compute_dtype).itemsize == 2 else 8
    tile_m = max(sub, (tile_m // sub) * sub)
    tile_m = min(tile_m, _round_up(M, sub))
    M_p = _round_up(M, tile_m)

    # Lane-align every feature dim (zero padding is semantically neutral here:
    # padded x cols hit zero w1 rows, padded H cols give GELU(0)=0 against zero
    # w2 rows, padded output cols are sliced away).
    D_in_p = _round_up(D_in, 128)
    H_p = _round_up(H, 128)
    D_out_p = _round_up(D_out, 128)

    # Hidden chunk: a multiple of 128 that divides H_p (caps per-step VMEM and
    # the live (tm, th) GELU intermediate).
    if H_p <= hidden_tile:
        th = H_p
    else:
        th = next((c for c in (hidden_tile, 512, 384, 256, 128) if H_p % c == 0), 128)

    x2d = _pad_axis(_pad_axis(x.reshape(M, D_in), 0, M_p), 1, D_in_p)
    x2d = x2d.astype(compute_dtype)
    w1p = _pad_axis(_pad_axis(w1, 0, D_in_p), 1, H_p).astype(compute_dtype)
    w2p = _pad_axis(_pad_axis(w2, 0, H_p), 1, D_out_p).astype(compute_dtype)
    b1p = _pad_axis(b1.reshape(1, H), 1, H_p).astype(jnp.float32)
    b2p = _pad_axis(b2.reshape(1, D_out), 1, D_out_p).astype(jnp.float32)

    grid = (M_p // tile_m, H_p // th)

    # Explicit VMEM budget: double-buffered input/output tiles + f32 accumulator
    # + headroom for the (tm, th) f32 GELU intermediate.
    def nbytes(shape, dt):
        return math.prod(shape) * jnp.dtype(dt).itemsize

    est = 2 * (nbytes((tile_m, D_in_p), compute_dtype)
               + nbytes((D_in_p, th), compute_dtype)
               + nbytes((1, H_p), jnp.float32)
               + nbytes((th, D_out_p), compute_dtype)
               + nbytes((1, D_out_p), jnp.float32)
               + nbytes((tile_m, D_out_p), out_dtype))
    est += nbytes((tile_m, D_out_p), jnp.float32)        # accumulator scratch
    est += 2 * nbytes((tile_m, th), jnp.float32)         # GELU intermediate headroom
    vmem_limit = int(min(max(2 * est, 32 * 2**20), 64 * 2**20))

    out2d = pl.pallas_call(
        _mlp_kernel,
        out_shape=jax.ShapeDtypeStruct((M_p, D_out_p), out_dtype),
        grid_spec=pltpu.PrefetchScalarGridSpec(
            num_scalar_prefetch=0,
            grid=grid,
            in_specs=[
                pl.BlockSpec((tile_m, D_in_p), lambda i, k: (i, 0)),   # x rows
                pl.BlockSpec((D_in_p, th), lambda i, k: (0, k)),       # W1 chunk
                pl.BlockSpec((1, th), lambda i, k: (0, k)),            # b1 chunk
                pl.BlockSpec((th, D_out_p), lambda i, k: (k, 0)),      # W2 chunk
                pl.BlockSpec((1, D_out_p), lambda i, k: (0, 0)),       # b2
            ],
            out_specs=pl.BlockSpec((tile_m, D_out_p), lambda i, k: (i, 0)),
            scratch_shapes=[pltpu.VMEM((tile_m, D_out_p), jnp.float32)],
        ),
        compiler_params=pltpu.CompilerParams(
            dimension_semantics=("parallel", "arbitrary"),
            vmem_limit_bytes=vmem_limit),
    )(x2d, w1p, b1p, w2p, b2p)

    out = out2d[:M, :D_out]
    return out.reshape(orig_shape[:-1] + (D_out,))


def _reference_mlp(x, w1, b1, w2, b2, compute_dtype=jnp.float32):
    """Pure-JAX reference with the same operand dtypes / f32 accumulation."""
    D_in = x.shape[-1]
    xc = x.reshape(-1, D_in).astype(compute_dtype)
    h = jnp.dot(xc, w1.astype(compute_dtype),
                preferred_element_type=jnp.float32) + b1
    h = 0.5 * h * (1.0 + lax.erf(h * _INV_SQRT2))
    o = jnp.dot(h.astype(compute_dtype), w2.astype(compute_dtype),
                preferred_element_type=jnp.float32) + b2
    return o.reshape(x.shape[:-1] + (w2.shape[1],)).astype(x.dtype)


def _make_inputs(key, D_in, H, D_out, B, N):
    kx, kw1, kb1, kw2, kb2 = jax.random.split(key, 5)
    x = jax.random.normal(kx, (B, N, D_in), jnp.float32)
    # nn.Linear-style uniform(-1/sqrt(fan_in), 1/sqrt(fan_in)) init.
    lim1 = 1.0 / math.sqrt(D_in)
    lim2 = 1.0 / math.sqrt(H)
    w1 = jax.random.uniform(kw1, (D_in, H), jnp.float32, -lim1, lim1)
    b1 = jax.random.uniform(kb1, (H,), jnp.float32, -lim1, lim1)
    w2 = jax.random.uniform(kw2, (H, D_out), jnp.float32, -lim2, lim2)
    b2 = jax.random.uniform(kb2, (D_out,), jnp.float32, -lim2, lim2)
    return x, w1, b1, w2, b2


if __name__ == "__main__":
    key = jax.random.PRNGKey(0)
    k1, k2 = jax.random.split(key)

    # --- Test 1: small lane-aligned ViT-ish shapes, bf16 MXU operands. ---
    B, N, D_in, H, D_out = 2, 8, 128, 256, 128
    x, w1, b1, w2, b2 = _make_inputs(k1, D_in, H, D_out, B, N)
    out = jax.block_until_ready(
        mlp_forward(x, w1, b1, w2, b2, compute_dtype=jnp.bfloat16))
    assert out.shape == (B, N, D_out)
    ref_bf16 = _reference_mlp(x, w1, b1, w2, b2, compute_dtype=jnp.bfloat16)
    ref_f32 = _reference_mlp(x, w1, b1, w2, b2, compute_dtype=jnp.float32)
    assert jnp.allclose(out, ref_bf16, atol=1e-3, rtol=1e-3), "bf16 path mismatch"
    assert jnp.allclose(out, ref_f32, atol=3e-2, rtol=3e-2), "drifted from f32 ref"

    # --- Test 2: unaligned dims exercise the zero-padding path (f32 compute). ---
    B, N, D_in, H, D_out = 2, 6, 48, 72, 40
    x, w1, b1, w2, b2 = _make_inputs(k2, D_in, H, D_out, B, N)
    out = jax.block_until_ready(
        mlp_forward(x, w1, b1, w2, b2, compute_dtype=jnp.float32))
    assert out.shape == (B, N, D_out)
    ref = _reference_mlp(x, w1, b1, w2, b2, compute_dtype=jnp.float32)
    assert jnp.allclose(out, ref, atol=1e-4, rtol=1e-4), "padded path mismatch"

    print("KERNEL_OK")
</pallas_src>

<mosaic_0001>
module attributes {stable_mosaic.version = 11 : i64} {
  func.func @_mlp_kernel(%arg0: i32, %arg1: i32, %arg2: memref<16x128xbf16, #tpu.memory_space<vmem>>, %arg3: memref<128x256xbf16, #tpu.memory_space<vmem>>, %arg4: memref<1x256xf32, #tpu.memory_space<vmem>>, %arg5: memref<256x128xbf16, #tpu.memory_space<vmem>>, %arg6: memref<1x128xf32, #tpu.memory_space<vmem>>, %arg7: memref<16x128xf32, #tpu.memory_space<vmem>>, %arg8: memref<16x128xf32, #tpu.memory_space<vmem>>) attributes {dimension_semantics = [#tpu.dimension_semantics<parallel>, #tpu.dimension_semantics<arbitrary>], iteration_bounds = array<i64: 1, 1>, scalar_prefetch = 0 : i64, scratch_operands = 1 : i64, tpu.core_type = #tpu.core_type<tc>, window_params = [{transform_indices = @transform_0, window_bounds = array<i64: 16, 128>}, {transform_indices = @transform_1, window_bounds = array<i64: 128, 256>}, {transform_indices = @transform_2, window_bounds = array<i64: 1, 256>}, {transform_indices = @transform_3, window_bounds = array<i64: 256, 128>}, {pipeline_mode = #tpu.pipeline_mode<synchronous>, transform_indices = @transform_4, window_bounds = array<i64: 1, 128>}, {transform_indices = @transform_5, window_bounds = array<i64: 16, 128>}]} {
    %c0_i32 = arith.constant 0 : i32
    %0 = arith.cmpi eq, %arg1, %c0_i32 : i32
    %1 = arith.extui %0 : i1 to i32
    %c0_i32_0 = arith.constant 0 : i32
    %2 = arith.cmpi ne, %1, %c0_i32_0 : i32
    scf.if %2 {
      %cst_18 = arith.constant 0.000000e+00 : f32
      %26 = vector.broadcast %cst_18 : f32 to vector<16x128xf32>
      %c0_19 = arith.constant 0 : index
      %c0_20 = arith.constant 0 : index
      %27 = vector.load %arg8[%c0_19, %c0_20] : memref<16x128xf32, #tpu.memory_space<vmem>>, vector<16x128xf32>
      tpu.vector_store %arg8[%c0_19, %c0_20], %26 {strides = array<i32>} : memref<16x128xf32, #tpu.memory_space<vmem>>, vector<16x128xf32>,
    } else {
    }
    %c0 = arith.constant 0 : index
    %c0_1 = arith.constant 0 : index
    %3 = vector.load %arg2[%c0, %c0_1] : memref<16x128xbf16, #tpu.memory_space<vmem>>, vector<16x128xbf16>
    %c0_2 = arith.constant 0 : index
    %c0_3 = arith.constant 0 : index
    %4 = vector.load %arg3[%c0_2, %c0_3] : memref<128x256xbf16, #tpu.memory_space<vmem>>, vector<128x256xbf16>
    %cst = arith.constant dense<0.000000e+00> : vector<16x256xf32>
    %5 = tpu.matmul %3, %4, %cst {dimension_numbers = #tpu.dot_dimension_numbers<[1], [0], [0], [1], [0, 0, 1, 1], [], []>} : vector<16x128xbf16>, vector<128x256xbf16>, vector<16x256xf32> -> vector<16x256xf32>
    %c0_4 = arith.constant 0 : index
    %c0_5 = arith.constant 0 : index
    %6 = vector.load %arg4[%c0_4, %c0_5] : memref<1x256xf32, #tpu.memory_space<vmem>>, vector<1x256xf32>
    %7 = vector.broadcast %6 : vector<1x256xf32> to vector<16x256xf32>
    %8 = arith.addf %5, %7 : vector<16x256xf32>
    %cst_6 = arith.constant 5.000000e-01 : f32
    %9 = vector.broadcast %cst_6 : f32 to vector<16x256xf32>
    %10 = arith.mulf %9, %8 : vector<16x256xf32>
    %cst_7 = arith.constant 0.707106769 : f32
    %11 = vector.broadcast %cst_7 : f32 to vector<16x256xf32>
    %12 = arith.mulf %8, %11 : vector<16x256xf32>
    %13 = math.erf %12 : vector<16x256xf32>
    %cst_8 = arith.constant 1.000000e+00 : f32
    %14 = vector.broadcast %cst_8 : f32 to vector<16x256xf32>
    %15 = arith.addf %14, %13 : vector<16x256xf32>
    %16 = arith.mulf %10, %15 : vector<16x256xf32>
    %c0_9 = arith.constant 0 : index
    %c0_10 = arith.constant 0 : index
    %17 = vector.load %arg8[%c0_9, %c0_10] : memref<16x128xf32, #tpu.memory_space<vmem>>, vector<16x128xf32>
    %18 = arith.truncf %16 : vector<16x256xf32> to vector<16x256xbf16>
    %c0_11 = arith.constant 0 : index
    %c0_12 = arith.constant 0 : index
    %19 = vector.load %arg5[%c0_11, %c0_12] : memref<256x128xbf16, #tpu.memory_space<vmem>>, vector<256x128xbf16>
    %cst_13 = arith.constant dense<0.000000e+00> : vector<16x128xf32>
    %20 = tpu.matmul %18, %19, %cst_13 {dimension_numbers = #tpu.dot_dimension_numbers<[1], [0], [0], [1], [0, 0, 1, 1], [], []>} : vector<16x256xbf16>, vector<256x128xbf16>, vector<16x128xf32> -> vector<16x128xf32>
    %21 = arith.addf %17, %20 : vector<16x128xf32>
    %c0_14 = arith.constant 0 : index
    %c0_15 = arith.constant 0 : index
    %22 = vector.load %arg8[%c0_14, %c0_15] : memref<16x128xf32, #tpu.memory_space<vmem>>, vector<16x128xf32>
    tpu.vector_store %arg8[%c0_14, %c0_15], %21 {strides = array<i32>} : memref<16x128xf32, #tpu.memory_space<vmem>>, vector<16x128xf32>,
    %c0_i32_16 = arith.constant 0 : i32
    %23 = arith.cmpi eq, %arg1, %c0_i32_16 : i32
    %24 = arith.extui %23 : i1 to i32
    %c0_i32_17 = arith.constant 0 : i32
    %25 = arith.cmpi ne, %24, %c0_i32_17 : i32
    scf.if %25 {
      %c0_18 = arith.constant 0 : index
      %c0_19 = arith.constant 0 : index
      %26 = vector.load %arg8[%c0_18, %c0_19] : memref<16x128xf32, #tpu.memory_space<vmem>>, vector<16x128xf32>
      %c0_20 = arith.constant 0 : index
      %c0_21 = arith.constant 0 : index
      %27 = vector.load %arg6[%c0_20, %c0_21] : memref<1x128xf32, #tpu.memory_space<vmem>>, vector<1x128xf32>
      %28 = vector.broadcast %27 : vector<1x128xf32> to vector<16x128xf32>
      %29 = arith.addf %26, %28 : vector<16x128xf32>
      %c0_22 = arith.constant 0 : index
      %c0_23 = arith.constant 0 : index
      %30 = vector.load %arg7[%c0_22, %c0_23] : memref<16x128xf32, #tpu.memory_space<vmem>>, vector<16x128xf32>
      tpu.vector_store %arg7[%c0_22, %c0_23], %29 {strides = array<i32>} : memref<16x128xf32, #tpu.memory_space<vmem>>, vector<16x128xf32>,
    } else {
    }
    return
  }
  func.func @transform_0(%arg0: i32, %arg1: i32) -> (i32, i32) {
    %c0_i32 = arith.constant 0 : i32
    %c0_i32_0 = arith.constant 0 : i32
    return %arg0, %c0_i32 : i32, i32
  }
  func.func @transform_1(%arg0: i32, %arg1: i32) -> (i32, i32) {
    %c0_i32 = arith.constant 0 : i32
    %c0_i32_0 = arith.constant 0 : i32
    return %c0_i32, %arg1 : i32, i32
  }
  func.func @transform_2(%arg0: i32, %arg1: i32) -> (i32, i32) {
    %c0_i32 = arith.constant 0 : i32
    %c0_i32_0 = arith.constant 0 : i32
    return %c0_i32, %arg1 : i32, i32
  }
  func.func @transform_3(%arg0: i32, %arg1: i32) -> (i32, i32) {
    %c0_i32 = arith.constant 0 : i32
    %c0_i32_0 = arith.constant 0 : i32
    return %arg1, %c0_i32 : i32, i32
  }
  func.func @transform_4(%arg0: i32, %arg1: i32) -> (i32, i32) {
    %c0_i32 = arith.constant 0 : i32
    %c0_i32_0 = arith.constant 0 : i32
    %c0_i32_1 = arith.constant 0 : i32
    return %c0_i32, %c0_i32_0 : i32, i32
  }
  func.func @transform_5(%arg0: i32, %arg1: i32) -> (i32, i32) {
    %c0_i32 = arith.constant 0 : i32
    %c0_i32_0 = arith.constant 0 : i32
    return %arg0, %c0_i32 : i32, i32
  }
}

</mosaic_0001>

<bundles_post_ra>
// kernel: tpu_custom_call.1
= control target key start
LH: loop header
LB: loop body
LE: loop exit
PB: predicated region body
PF: predicated region fallthrough
CT: control target
= control target key end

     0   :  { %10 = vsyncpa [#allocation4], 0  ;;  %s766_s0 = inlined_call_operand.hbm [shape: bf16[16,128], index: 0, kind: input, shape index: {}]   ;;  %s767_s1 = inlined_call_operand.hbm [shape: bf16[128,256], index: 1, kind: input, shape index: {}]   ;;  %s768_s2 = inlined_call_operand.vmem [shape: f32[1,256], index: 2, kind: input, shape index: {}]   ;;  %s769_s3 = inlined_call_operand.hbm [shape: bf16[256,128], index: 3, kind: input, shape index: {}]   ;;  %s770_s4 = inlined_call_operand.vmem [shape: f32[1,128], index: 4, kind: input, shape index: {}]   ;;  %s771_s5 = inlined_call_operand.hbm [shape: f32[16,128], index: 5, kind: output, shape index: {}]  }
   0x1   :  { %11 = vsyncpa [#allocation7], 0 }
   0x2   :  { %12 = vsyncpa [#allocation5], 0  ;;  %s667_s18 = smov [#allocation6]   ;;  %s573_s22 = scalar_lea.hbm %s767_s1, 2048 }
   0x3   :  { %s30_s19 = sshll.u32 %s667_s18, 4  ;;  %p574_p0 = scmp.ne.s32.totalorder %s767_s1, %s573_s22  ;;  %s31_s19 = int_to_ptr.vmem [resolvable:$true] %s30_s19 }
   0x4   :  { %p577_p1 = scmp.lt.u32.totalorder %s573_s22, %s767_s1 }
   0x6   :  { %p579_p2 = pnand %p577_p1, %p574_p0 }
   0x8   :  { %582 = shalt.err (!%p579_p2)
}
   0x9   :  { %s583_s27 = scalar_lea.vmem %s31_s19, 2048  ;;  %p588_p4 = scmp.lt.s32.totalorder %s31_s19, %s31_s19 }
   0xa   :  { %p584_p3 = scmp.ne.s32.totalorder %s31_s19, %s583_s27  ;;  %p589_p5 = scmp.lt.s32.totalorder %s583_s27, %s583_s27 }
   0xc   :  { %p590_p6 = por %p589_p5, %p588_p4 }
   0xe   :  { %p591_p7 = pnand %p590_p6, %p584_p3 }
  0x10   :  { %594 = shalt.err (!%p591_p7)
}
  0x11   :  { %s668_s28 = smov 128   ;;  %s669_s29 = smov 8  }
  0x12   :  { %36 = dma.hbm_to_vmem [thread:$0]  %s767_s1, 2048, %s31_s19, [#allocation7], %s668_s28, %s668_s28, %s669_s29  }
  0x13   :  { %s670_s7 = smov [#allocation3]   ;;  %s595_s11 = scalar_lea.hbm %s766_s0, 128 }
  0x14   :  { %s18_s8 = sshll.u32 %s670_s7, 4  ;;  %p596_p8 = scmp.ne.s32.totalorder %s766_s0, %s595_s11  ;;  %s19_s8 = int_to_ptr.vmem [resolvable:$true] %s18_s8 }
  0x15   :  { %p599_p9 = scmp.lt.u32.totalorder %s595_s11, %s766_s0 }
  0x17   :  { %p601_p10 = pnand %p599_p9, %p596_p8 }
  0x19   :  { %604 = shalt.err (!%p601_p10)
}
  0x1a   :  { %s605_s16 = scalar_lea.vmem %s19_s8, 128  ;;  %p610_p12 = scmp.lt.s32.totalorder %s19_s8, %s19_s8 }
  0x1b   :  { %p606_p11 = scmp.ne.s32.totalorder %s19_s8, %s605_s16  ;;  %p611_p13 = scmp.lt.s32.totalorder %s605_s16, %s605_s16 }
  0x1d   :  { %p612_p0 = por %p611_p13, %p610_p12 }
  0x1f   :  { %p613_p1 = pnand %p612_p0, %p606_p11 }
  0x21   :  { %616 = shalt.err (!%p613_p1)
}
  0x22   :  { %s671_s1 = smov 64   ;;  %s672_s17 = smov 4  }
  0x23   :  { %24 = dma.hbm_to_vmem [thread:$0]  %s766_s0, 128, %s19_s8, [#allocation4], %s671_s1, %s671_s1, %s672_s17  }
  0x24   :  { %s673_s20 = smov [#allocation8]   ;;  %s617_s24 = scalar_lea.hbm %s769_s3, 2048 }
  0x25   :  { %s44_s21 = sshll.u32 %s673_s20, 4  ;;  %p618_p2 = scmp.ne.s32.totalorder %s769_s3, %s617_s24  ;;  %s45_s21 = int_to_ptr.vmem [resolvable:$true] %s44_s21 }
  0x26   :  { %p621_p3 = scmp.lt.u32.totalorder %s617_s24, %s769_s3 }
  0x28   :  { %p623_p4 = pnand %p621_p3, %p618_p2 }
  0x2a   :  { %626 = shalt.err (!%p623_p4)
}
  0x2b   :  { %s627_s6 = scalar_lea.vmem %s45_s21, 2048  ;;  %p632_p6 = scmp.lt.s32.totalorder %s45_s21, %s45_s21 }
  0x2c   :  { %p628_p5 = scmp.ne.s32.totalorder %s45_s21, %s627_s6  ;;  %p633_p7 = scmp.lt.s32.totalorder %s627_s6, %s627_s6 }
  0x2e   :  { %p634_p8 = por %p633_p7, %p632_p6 }
  0x30   :  { %p635_p9 = pnand %p634_p8, %p628_p5 }
  0x32   :  { %638 = shalt.err (!%p635_p9)
}
  0x33   :  { %50 = dma.hbm_to_vmem [thread:$0]  %s769_s3, 2048, %s45_s21, [#allocation7], %s671_s1, %s671_s1, %s672_s17  }
  0x34   :  { %661 = dma.done.wait [#allocation4], 128  }
  0x35   :  { %662 = vsyncadd [#allocation4], 4294967168 }
  0x36   :  { %663 = dma.done.wait [#allocation7], 4096  }
  0x37   :  { %664 = vsyncadd [#allocation7], 4294963200  ;;  %v674_v0 = vmov 0   ;;  %v524_v1 = vld [vmem:[#allocation6 + $0x4] ss:$8 sps:$4 sm:$0xff]   ;;  %v548_v21 = vld [vmem:[#allocation3] sm:$0xff]   ;;  %v89_v34 = vlaneseq }
  0x38   :  { %217 = vmatprep.mubr.bf16.mxu0 %v674_v0  ;;  %v526_v2 = vld [vmem:[#allocation6] ss:$8 sps:$4 sm:$0xff]   ;;  %185 = vmatprep.subr.bf16.mxu0 %v524_v1  ;;  %v527_v3 = vld [vmem:[#allocation6 + $0x14] ss:$8 sps:$4 sm:$0xff]   ;;  %v529_v4 = vld [vmem:[#allocation6 + $0x10] ss:$8 sps:$4 sm:$0xff]  }
  0x39   :  { %186 = vmatpush1.bf16.msra.mxu0 %v526_v2  ;;  %v530_v5 = vld [vmem:[#allocation6 + $0x24] ss:$8 sps:$4 sm:$0xff]   ;;  %v532_v6 = vld [vmem:[#allocation6 + $0x20] ss:$8 sps:$4 sm:$0xff]   ;;  %v533_v7 = vld [vmem:[#allocation6 + $0x34] ss:$8 sps:$4 sm:$0xff]  }
  0x3a   :  { %187 = vmatprep.subr.bf16.mxu0 %v527_v3  ;;  %v535_v8 = vld [vmem:[#allocation6 + $0x30] ss:$8 sps:$4 sm:$0xff]   ;;  %v536_v9 = vld [vmem:[#allocation6 + $0x44] ss:$8 sps:$4 sm:$0xff]   ;;  %v538_v11 = vld [vmem:[#allocation6 + $0x40] ss:$8 sps:$4 sm:$0xff]  }
  0x3b   :  { %v549_v10 = vld [vmem:[#allocation8 + $0x40] sm:$0xff]   ;;  %v551_v13 = vld [vmem:[#allocation8 + $0x48] sm:$0xff]   ;;  %v539_v14 = vld [vmem:[#allocation6 + $0x54] ss:$8 sps:$4 sm:$0xff]   ;;  %v90_v35 = vshrl.u32 %v89_v34, 7  ;;  %s675_s10 = smov [#allocation9]  }
  0x3c   :  { %v550_v12 = vld [vmem:[#allocation8] sm:$0xff]   ;;  %493 = vmatprep.subr.bf16.mxu1 %v549_v10  ;;  %v552_v15 = vld [vmem:[#allocation8 + $0x8] sm:$0xff]   ;;  %v541_v16 = vld [vmem:[#allocation6 + $0x50] ss:$8 sps:$4 sm:$0xff]   ;;  %s446_s11 = sshll.u32 %s675_s10, 4  ;;  %s447_s11 = int_to_ptr.vmem [resolvable:$true] %s446_s11 }
  0x3d   :  { %188 = vmatpush1.bf16.msra.mxu0 %v529_v4  ;;  %494 = vmatpush3.bf16.msra.mxu1 %v550_v12  ;;  %v542_v17 = vld [vmem:[#allocation6 + $0x64] ss:$8 sps:$4 sm:$0xff]   ;;  %v544_v18 = vld [vmem:[#allocation6 + $0x60] ss:$8 sps:$4 sm:$0xff]   ;;  %v545_v19 = vld [vmem:[#allocation6 + $0x74] ss:$8 sps:$4 sm:$0xff]   ;;  %p644_p11 = scmp.lt.s32.totalorder %s447_s11, %s447_s11 }
  0x3e   :  { %189 = vmatprep.subr.bf16.mxu0 %v530_v5  ;;  %495 = vmatprep.subr.bf16.mxu1 %v551_v13  ;;  %v547_v20 = vld [vmem:[#allocation6 + $0x70] ss:$8 sps:$4 sm:$0xff]   ;;  %v557_v26 = vld [vmem:[#allocation8 + $0x60] sm:$0xff]   ;;  %v559_v28 = vld [vmem:[#allocation8 + $0x68] sm:$0xff]   ;;  %v91_v36 = vsub.s32 0, %v90_v35  ;;  %v95_v38 = vsub.s32 1, %v90_v35 }
  0x3f   :  { %v553_v22 = vld [vmem:[#allocation8 + $0x50] sm:$0xff]   ;;  %v555_v24 = vld [vmem:[#allocation8 + $0x58] sm:$0xff]   ;;  %v558_v27 = vld [vmem:[#allocation8 + $0x20] sm:$0xff]   ;;  %s639_s12 = scalar_lea.vmem %s447_s11, 256 }
  0x40   :  { %v554_v23 = vld [vmem:[#allocation8 + $0x10] sm:$0xff]   ;;  %v556_v25 = vld [vmem:[#allocation8 + $0x18] sm:$0xff]   ;;  %v560_v29 = vld [vmem:[#allocation8 + $0x28] sm:$0xff]   ;;  %p640_p10 = scmp.ne.s32.totalorder %s447_s11, %s639_s12  ;;  %p645_p12 = scmp.lt.s32.totalorder %s639_s12, %s639_s12 }
  0x41   :  { %190 = vmatpush1.bf16.msra.mxu0 %v532_v6  ;;  %496 = vmatpush3.bf16.msra.mxu1 %v552_v15  ;;  %v561_v30 = vld [vmem:[#allocation8 + $0x70] sm:$0xff]   ;;  %v563_v32 = vld [vmem:[#allocation8 + $0x78] sm:$0xff]  }
  0x42   :  { %191 = vmatprep.subr.bf16.mxu0 %v533_v7  ;;  %497 = vmatprep.subr.bf16.mxu1 %v553_v22  ;;  %v562_v31 = vld [vmem:[#allocation8 + $0x30] sm:$0xff]   ;;  %v564_v33 = vld [vmem:[#allocation8 + $0x38] sm:$0xff]   ;;  %p646_p13 = por %p645_p12, %p644_p11 }
  0x43   :  { %v87_v37 = vld [vmem:[%s768_s2] sm:$0x3] }
  0x44   :  { %v92_v39 = vrot.slane %v87_v37, %v91_v36  ;;  %v96_v40 = vrot.slane %v87_v37, %v95_v38  ;;  %p647_p0 = pnand %p646_p13, %p640_p10 }
  0x45   :  { %192 = vmatpush1.bf16.msra.mxu0 %v535_v8  ;;  %498 = vmatpush3.bf16.msra.mxu1 %v554_v23 }
  0x46   :  { %193 = vmatprep.subr.bf16.mxu0 %v536_v9  ;;  %499 = vmatprep.subr.bf16.mxu1 %v555_v24  ;;  %v492_v9 = vld [vmem:[%s770_s4] ss:$0 sm:$0xff] }
  0x49   :  { %194 = vmatpush1.bf16.msra.mxu0 %v538_v11  ;;  %500 = vmatpush3.bf16.msra.mxu1 %v556_v25 }
  0x4a   :  { %195 = vmatprep.subr.bf16.mxu0 %v539_v14  ;;  %501 = vmatprep.subr.bf16.mxu1 %v557_v26 }
  0x4d   :  { %196 = vmatpush1.bf16.msra.mxu0 %v541_v16  ;;  %502 = vmatpush3.bf16.msra.mxu1 %v558_v27 }
  0x4e   :  { %197 = vmatprep.subr.bf16.mxu0 %v542_v17  ;;  %503 = vmatprep.subr.bf16.mxu1 %v559_v28 }
  0x51   :  { %198 = vmatpush1.bf16.msra.mxu0 %v544_v18  ;;  %504 = vmatpush3.bf16.msra.mxu1 %v560_v29 }
  0x52   :  { %199 = vmatprep.subr.bf16.mxu0 %v545_v19  ;;  %505 = vmatprep.subr.bf16.mxu1 %v561_v30 }
  0x55   :  { %200 = vmatpush1.bf16.msra.mxu0 %v547_v20  ;;  %506 = vmatpush3.bf16.msra.mxu1 %v562_v31 }
  0x56   :  { %507 = vmatprep.subr.bf16.mxu1 %v563_v32 }
  0x58   :  { %218 = vmatmul.mubr.bf16.vlgmr.msra.gmra.mrb[0].mxu0 %v548_v21 }
  0x59   :  { %508 = vmatpush3.bf16.msra.mxu1 %v564_v33 }
 0x12b   :  { %v219_v41 = vpop.f32.mrb[0].mxu0 }
 0x12c   :  { %v220_v42 = vadd.f32 %v219_v41, %v92_v39  ;;  %v221_v43 = vpop.f32.mrb[1].mxu0 }
 0x12d   :  { %v222_v44 = vadd.f32 %v221_v43, %v96_v40  ;;  %v223_v45 = vpop.f32.mrb[2].mxu0 }
 0x12e   :  { %v232_v46 = vmul.f32 0.70710677, %v220_v42  ;;  %v224_v47 = vadd.f32 %v223_v45, %v92_v39  ;;  %v225_v48 = vpop.f32.mrb[3].mxu0  ;;  %v228_v59 = vmul.f32 0.5, %v220_v42 }
 0x12f   :  { %v233_v49 = vmul.f32 0.70710677, %v222_v44  ;;  %v226_v50 = vadd.f32 %v225_v48, %v96_v40  ;;  %v229_v62 = vmul.f32 0.5, %v222_v44 }
 0x130   :  { %565 = verf.f32 %v232_v46  ;;  %v234_v51 = vmul.f32 0.70710677, %v224_v47  ;;  %v230_v60 = vmul.f32 0.5, %v224_v47 }
 0x131   :  { %567 = verf.f32 %v233_v49  ;;  %v235_v52 = vmul.f32 0.70710677, %v226_v50  ;;  %v231_v63 = vmul.f32 0.5, %v226_v50 }
 0x132   :  { %569 = verf.f32 %v234_v51 }
 0x133   :  { %571 = verf.f32 %v235_v52 }
 0x13a   :  { %v566_v53 = vpop.eup %565 }
 0x13b   :  { %v568_v54 = vpop.eup %567  ;;  %v240_v55 = vadd.f32 1.0, %v566_v53 }
 0x13c   :  { %v570_v56 = vpop.eup %569  ;;  %v241_v57 = vadd.f32 1.0, %v568_v54 }
 0x13d   :  { %v572_v58 = vpop.eup %571  ;;  %v242_v61 = vadd.f32 1.0, %v570_v56  ;;  %v244_v1 = vmul.f32 %v240_v55, %v228_v59 }
 0x13e   :  { %v243_v0 = vadd.f32 1.0, %v572_v58  ;;  %v245_v3 = vmul.f32 %v241_v57, %v229_v62 }
 0x13f   :  { %v246_v2 = vmul.f32 %v242_v61, %v230_v60 }
 0x140   :  { %v247_v4 = vmul.f32 %v243_v0, %v231_v63 }
 0x141   :  { %v250_v5 = vpack.c.bf16 %v246_v2, %v244_v1 }
 0x142   :  { %v251_v6 = vpack.c.bf16 %v247_v4, %v245_v3 }
 0x144   :  { %412 = vmatprep.mubr.bf16.mxu1 %v251_v6 }
 0x145   :  { %413 = vmatmul.mubr.bf16.vlgmr.msra.gmra.mrb[0].mxu1 %v250_v5 }
 0x218   :  { %v509_v7 = vpop.f32.mrb[0].mxu1 }
 0x219   :  { %v510_v8 = vpop.f32.mrb[1].mxu1 }
 0x21a   :  { %v511_v10 = vadd.f32 %v510_v8, %v509_v7  ;;  %v512_v11 = vpop.f32.mrb[2].mxu1 }
 0x21b   :  { %v513_v12 = vpop.f32.mrb[3].mxu1 }
 0x21c   :  { %v437_v13 = vadd.f32 %v511_v10, %v492_v9  ;;  %v514_v14 = vadd.f32 %v513_v12, %v512_v11 }
 0x21e   :  { %439 = vst [vmem:[#allocation9] sm:$0xff] %v437_v13  ;;  %v438_v15 = vadd.f32 %v514_v14, %v492_v9 }
 0x220   :  { %440 = vst [vmem:[#allocation9 + $0x8] sm:$0xff] %v438_v15 }
 0x221   :  { %650 = shalt.err (!%p647_p0)
}
 0x222   :  { %s651_s14 = scalar_lea.hbm %s771_s5, 256 }
 0x223   :  { %p652_p1 = scmp.ne.s32.totalorder %s771_s5, %s651_s14  ;;  %p655_p2 = scmp.lt.u32.totalorder %s651_s14, %s771_s5 }
 0x225   :  { %p657_p3 = pnand %p655_p2, %p652_p1 }
 0x227   :  { %660 = shalt.err (!%p657_p3)
}
 0x228   :  { %452 = dma.vmem_to_hbm [thread:$0]  %s447_s11, 256, %s771_s5, [#allocation5], %s668_s28, %s668_s28, %s669_s29  }
 0x229   :  { %665 = dma.done.wait [#allocation5], 256  }
 0x22a   :  { %666 = vsyncadd [#allocation5], 4294967040 }
 0x22b   :  { %456 = vsyncpa [#allocation4], 1 }
 0x22c   :  { %457 = vsyncpa [#allocation7], 1 }
 0x22d   :  { %458 = vsyncpa [#allocation5], 1 }

</bundles_post_ra>
